<compile_context>
chip_gen: v7x
topology: tpu7x:2x2x1
jax: 0.10.0
libtpu: 0.0.40
codegen_flags: <defaults>
</compile_context>

<pallas_src>
import jax
import jax.numpy as jnp
from jax.experimental import pallas as pl
from jax.experimental.pallas import tpu as pltpu


def _caser_hconv_kernel(x_ref, w_ref, b_ref, o_ref):
    """One batch tile per grid step.

    x_ref: (bt, T, Kp)  im2col-unfolded input slab (Kp = h*E padded to 128 lanes)
    w_ref: (Kp, Fp)     flattened conv weights (Fp = num_filters padded to 128 lanes)
    b_ref: (1, Fp)      conv bias (f32, zero-padded to Fp)
    o_ref: (bt, Fp)     pooled output for this batch tile
    """
    bt, t, kp = x_ref.shape
    fp = w_ref.shape[1]

    # Single MXU matmul for the whole conv of this batch tile (M = bt*T, K = Kp).
    x2 = x_ref[...].reshape(bt * t, kp)
    s = jnp.dot(x2, w_ref[...], preferred_element_type=jnp.float32)   # (bt*T, Fp)

    # MaxPool1d over the full valid window == max over the time axis.
    pooled = jnp.max(s.reshape(bt, t, fp), axis=1)                    # (bt, Fp)

    # Bias is per-filter (time-constant) and ReLU is monotone non-decreasing, so
    # bias + activation commute with the time max; apply them on the small pooled
    # tile instead of the full (bt, T, Fp) slab.
    # TODO(synk): a non-monotone activation_fn would need activation before the max.
    o_ref[...] = jnp.maximum(pooled + b_ref[0], 0.0)                  # lane-dense store


def _pick_batch_tile(b, row_bytes, *, target=512, x_block_budget=4 << 20):
    """Pick the batch tile.

    Preference order: largest tile whose grid is even and >= 2 (keeps both v7x
    TensorCores busy on the "parallel" axis), then any grid >= 2, then the whole
    batch in one step.  Tiles must divide the batch and be a multiple of 8
    sublanes (or equal the full batch) so the (bt, Fp) output block is legal, and
    are capped so the double-buffered input block stays within x_block_budget.
    """
    max_by_vmem = max(1, x_block_budget // max(row_bytes, 1))
    cap = min(b, target, max_by_vmem)
    best_any = None
    best_one = None
    for t in range(cap, 0, -1):
        if b % t:
            continue
        if t % 8 != 0 and t != b:
            continue
        steps = b // t
        if steps >= 2 and steps % 2 == 0:
            return t                      # largest even-grid tile (descending scan)
        if steps >= 2 and best_any is None:
            best_any = t
        if best_one is None:
            best_one = t
    if best_any is not None:
        return best_any
    if best_one is not None:
        return best_one
    return b                              # pathological batch sizes: one step, full batch


def caser_horizontal_conv(x, weight, bias, *, kernel_height, batch_tile=None,
                          compute_dtype=jnp.float32):
    """x: (B, L, E); weight: (h, E, F); bias: (F,). Returns (B, F) float32."""
    b, l, e = x.shape
    h, e_w, f = weight.shape
    assert e_w == e and h == kernel_height
    t = l + 1 - h
    assert t > 0, "max_length must be >= kernel height"

    # im2col unfold in the wrapper: x_unf[n, t0] = concat_i x[n, t0 + i, :].
    x_unf = jnp.concatenate([x[:, i:i + t, :] for i in range(h)], axis=-1)   # (B, T, h*E)
    w_flat = weight.reshape(h * e, f)                                        # (h*E, F)

    # Pad K = h*E and F up to multiples of 128 lanes (exact: zeros / sliced off).
    k = h * e
    kp = pl.cdiv(k, 128) * 128
    fp = pl.cdiv(f, 128) * 128

    x_pad = jnp.pad(x_unf.astype(compute_dtype), ((0, 0), (0, 0), (0, kp - k)))
    w_pad = jnp.pad(w_flat.astype(compute_dtype), ((0, kp - k), (0, fp - f)))
    b_pad = jnp.pad(bias.astype(jnp.float32), (0, fp - f)).reshape(1, fp)

    itemsize = jnp.dtype(compute_dtype).itemsize
    row_bytes = t * kp * itemsize
    bt = batch_tile if batch_tile is not None else _pick_batch_tile(b, row_bytes)
    assert b % bt == 0, "batch tile must divide batch"

    # Explicit scoped-VMEM budget: covers double-buffered blocks with headroom,
    # above v5e's 16 MiB default and below v7x's 64 MiB physical VMEM.
    need = 2 * (bt * row_bytes + kp * fp * itemsize + fp * 4 + bt * fp * 4)
    vmem_limit = int(min(max(need + (4 << 20), 32 << 20), 48 << 20))

    out = pl.pallas_call(
        _caser_hconv_kernel,
        out_shape=jax.ShapeDtypeStruct((b, fp), jnp.float32),
        grid_spec=pl.GridSpec(
            grid=(b // bt,),
            in_specs=[
                pl.BlockSpec((bt, t, kp), lambda i: (i, 0, 0)),   # per-tile im2col slab
                pl.BlockSpec((kp, fp), lambda i: (0, 0)),         # weights: VMEM-resident
                pl.BlockSpec((1, fp), lambda i: (0, 0)),          # bias: VMEM-resident
            ],
            out_specs=pl.BlockSpec((bt, fp), lambda i: (i, 0)),
        ),
        compiler_params=pltpu.CompilerParams(
            dimension_semantics=("parallel",),   # shards batch across v7x's 2 TCs
            vmem_limit_bytes=vmem_limit,
        ),
    )(x_pad, w_pad, b_pad)

    return out[:, :f]


def reference_forward(x_nchw, weight_oihw, bias):
    """Pure-JAX reference matching the PyTorch module exactly."""
    conv = jax.lax.conv_general_dilated(
        x_nchw, weight_oihw,
        window_strides=(1, 1), padding="VALID",
        dimension_numbers=("NCHW", "OIHW", "NCHW"),
    ) + bias.reshape(1, -1, 1, 1)
    conv = conv[..., 0]                   # squeeze(3) -> (B, F, T)
    conv = jnp.maximum(conv, 0.0)         # relu
    return jnp.max(conv, axis=-1)         # MaxPool1d(T) + squeeze(2) -> (B, F)


if __name__ == "__main__":
    # Module-consistent small shapes: max_length L=16, embedding E=32,
    # num_filters F=8, kernel_size=(3, 32) (kernel width must equal E).
    L, E = 16, 32
    F, H = 8, 3

    key = jax.random.PRNGKey(0)
    k1, k2 = jax.random.split(key)

    def make_case(b, k):
        kx, kw, kb = jax.random.split(k, 3)
        x_nchw = jax.random.normal(kx, (b, 1, L, E), dtype=jnp.float32)
        w_oihw = jax.random.normal(kw, (F, 1, H, E), dtype=jnp.float32) * 0.1
        bias = jax.random.normal(kb, (F,), dtype=jnp.float32) * 0.1
        # Rearrange for the kernel layout documented above.
        x_ble = x_nchw[:, 0, :, :]                                  # (B, L, E)
        w_hef = jnp.transpose(w_oihw[:, 0, :, :], (1, 2, 0))        # (H, E, F)
        return x_nchw, w_oihw, bias, x_ble, w_hef

    # Case 1: batch=2, exact f32 parity with the PyTorch-equivalent reference.
    x_nchw, w_oihw, bias, x_ble, w_hef = make_case(2, k1)
    out = jax.block_until_ready(caser_horizontal_conv(x_ble, w_hef, bias, kernel_height=H))
    ref = reference_forward(x_nchw, w_oihw, bias)
    assert out.shape == (2, F)
    assert jnp.allclose(out, ref, atol=1e-4, rtol=1e-4), (out, ref)

    # Case 2: batch=32 exercises the batch-tiled (grid > 1, even) path.
    x_nchw, w_oihw, bias, x_ble, w_hef = make_case(32, k2)
    out = jax.block_until_ready(caser_horizontal_conv(x_ble, w_hef, bias, kernel_height=H))
    ref = reference_forward(x_nchw, w_oihw, bias)
    assert out.shape == (32, F)
    assert jnp.allclose(out, ref, atol=1e-4, rtol=1e-4), (out, ref)

    # Case 3: bf16 compute path (halves HBM bytes, 2x MXU on v6e/v7x); f32 accumulation.
    out_bf16 = jax.block_until_ready(
        caser_horizontal_conv(x_ble, w_hef, bias, kernel_height=H,
                              compute_dtype=jnp.bfloat16))
    assert out_bf16.shape == (32, F)
    assert jnp.allclose(out_bf16, ref, atol=1.5e-1, rtol=5e-2), (out_bf16, ref)

    print("KERNEL_OK")
</pallas_src>

<mosaic_0001>
module attributes {stable_mosaic.version = 11 : i64} {
  func.func @_caser_hconv_kernel(%arg0: i32, %arg1: memref<2x14x128xf32, #tpu.memory_space<vmem>>, %arg2: memref<128x128xf32, #tpu.memory_space<vmem>>, %arg3: memref<1x128xf32, #tpu.memory_space<vmem>>, %arg4: memref<2x128xf32, #tpu.memory_space<vmem>>) attributes {dimension_semantics = [#tpu.dimension_semantics<parallel>], iteration_bounds = array<i64: 1>, scalar_prefetch = 0 : i64, scratch_operands = 0 : i64, tpu.core_type = #tpu.core_type<tc>, window_params = [{transform_indices = @transform_0, window_bounds = array<i64: 2, 14, 128>}, {pipeline_mode = #tpu.pipeline_mode<synchronous>, transform_indices = @transform_1, window_bounds = array<i64: 128, 128>}, {pipeline_mode = #tpu.pipeline_mode<synchronous>, transform_indices = @transform_2, window_bounds = array<i64: 1, 128>}, {transform_indices = @transform_3, window_bounds = array<i64: 2, 128>}]} {
    %c0 = arith.constant 0 : index
    %c0_0 = arith.constant 0 : index
    %c0_1 = arith.constant 0 : index
    %0 = vector.load %arg1[%c0, %c0_0, %c0_1] : memref<2x14x128xf32, #tpu.memory_space<vmem>>, vector<2x14x128xf32>
    %1 = vector.shape_cast %0 : vector<2x14x128xf32> to vector<28x128xf32>
    %c0_2 = arith.constant 0 : index
    %c0_3 = arith.constant 0 : index
    %2 = vector.load %arg2[%c0_2, %c0_3] : memref<128x128xf32, #tpu.memory_space<vmem>>, vector<128x128xf32>
    %cst = arith.constant dense<0.000000e+00> : vector<28x128xf32>
    %3 = tpu.matmul %1, %2, %cst {dimension_numbers = #tpu.dot_dimension_numbers<[1], [0], [0], [1], [0, 0, 1, 1], [], []>} : vector<28x128xf32>, vector<128x128xf32>, vector<28x128xf32> -> vector<28x128xf32>
    %4 = vector.shape_cast %3 : vector<28x128xf32> to vector<2x14x128xf32>
    %cst_4 = arith.constant dense<0xFF800000> : vector<2x128xf32>
    %5 = vector.multi_reduction <maximumf>, %4, %cst_4 [1] : vector<2x14x128xf32> to vector<2x128xf32>
    %c0_5 = arith.constant 0 : index
    %c0_6 = arith.constant 0 : index
    %6 = vector.load %arg3[%c0_5, %c0_6] : memref<1x128xf32, #tpu.memory_space<vmem>>, vector<1x128xf32>
    %7 = vector.shape_cast %6 : vector<1x128xf32> to vector<128xf32>
    %8 = vector.shape_cast %7 : vector<128xf32> to vector<1x128xf32>
    %9 = vector.broadcast %8 : vector<1x128xf32> to vector<2x128xf32>
    %10 = arith.addf %5, %9 : vector<2x128xf32>
    %cst_7 = arith.constant 0.000000e+00 : f32
    %11 = vector.broadcast %cst_7 : f32 to vector<2x128xf32>
    %12 = arith.maximumf %10, %11 : vector<2x128xf32>
    %c0_8 = arith.constant 0 : index
    %c0_9 = arith.constant 0 : index
    %13 = vector.load %arg4[%c0_8, %c0_9] : memref<2x128xf32, #tpu.memory_space<vmem>>, vector<2x128xf32>
    tpu.vector_store %arg4[%c0_8, %c0_9], %12 {strides = array<i32>} : memref<2x128xf32, #tpu.memory_space<vmem>>, vector<2x128xf32>,
    return
  }
  func.func @transform_0(%arg0: i32) -> (i32, i32, i32) {
    %c0_i32 = arith.constant 0 : i32
    %c0_i32_0 = arith.constant 0 : i32
    %c0_i32_1 = arith.constant 0 : i32
    return %arg0, %c0_i32, %c0_i32_0 : i32, i32, i32
  }
  func.func @transform_1(%arg0: i32) -> (i32, i32) {
    %c0_i32 = arith.constant 0 : i32
    %c0_i32_0 = arith.constant 0 : i32
    %c0_i32_1 = arith.constant 0 : i32
    return %c0_i32, %c0_i32_0 : i32, i32
  }
  func.func @transform_2(%arg0: i32) -> (i32, i32) {
    %c0_i32 = arith.constant 0 : i32
    %c0_i32_0 = arith.constant 0 : i32
    %c0_i32_1 = arith.constant 0 : i32
    return %c0_i32, %c0_i32_0 : i32, i32
  }
  func.func @transform_3(%arg0: i32) -> (i32, i32) {
    %c0_i32 = arith.constant 0 : i32
    %c0_i32_0 = arith.constant 0 : i32
    return %arg0, %c0_i32 : i32, i32
  }
}

</mosaic_0001>

<bundles_post_ra>
// kernel: tpu_custom_call.1
= control target key start
LH: loop header
LB: loop body
LE: loop exit
PB: predicated region body
PF: predicated region fallthrough
CT: control target
= control target key end

     0   :  { %8 = vsyncpa [#allocation3], 0  ;;  %s720_s0 = inlined_call_operand.vmem [shape: f32[2,14,128], index: 0, kind: input, shape index: {}]   ;;  %s721_s1 = inlined_call_operand.hbm [shape: f32[128,128], index: 1, kind: input, shape index: {}]   ;;  %s722_s2 = inlined_call_operand.vmem [shape: f32[1,128], index: 2, kind: input, shape index: {}]   ;;  %s723_s3 = inlined_call_operand.hbm [shape: f32[2,128], index: 3, kind: output, shape index: {}]  }
   0x1   :  { %9 = vsyncpa [#allocation4], 0  ;;  %s614_s12 = smov [#allocation2]   ;;  %s566_s16 = scalar_lea.hbm %s721_s1, 2048 }
   0x2   :  { %s17_s13 = sshll.u32 %s614_s12, 4  ;;  %p567_p0 = scmp.ne.s32.totalorder %s721_s1, %s566_s16  ;;  %s18_s13 = int_to_ptr.vmem [resolvable:$true] %s17_s13 }
   0x3   :  { %p570_p1 = scmp.lt.u32.totalorder %s566_s16, %s721_s1 }
   0x5   :  { %p572_p2 = pnand %p570_p1, %p567_p0 }
   0x7   :  { %575 = shalt.err (!%p572_p2)
}
   0x8   :  { %s576_s21 = scalar_lea.vmem %s18_s13, 2048  ;;  %p581_p4 = scmp.lt.s32.totalorder %s18_s13, %s18_s13 }
   0x9   :  { %p577_p3 = scmp.ne.s32.totalorder %s18_s13, %s576_s21  ;;  %p582_p5 = scmp.lt.s32.totalorder %s576_s21, %s576_s21 }
   0xb   :  { %p583_p6 = por %p582_p5, %p581_p4 }
   0xd   :  { %p584_p7 = pnand %p583_p6, %p577_p3 }
   0xf   :  { %587 = shalt.err (!%p584_p7)
}
  0x10   :  { %s615_s22 = smov 128   ;;  %s616_s23 = smov 8  }
  0x11   :  { %23 = dma.hbm_to_vmem [thread:$0]  %s721_s1, 2048, %s18_s13, [#allocation3], %s615_s22, %s615_s22, %s616_s23  }
  0x12   :  { %610 = dma.done.wait [#allocation3], 2048  }
  0x13   :  { %611 = vsyncadd [#allocation3], 4294965248  ;;  %v617_v0 = vmov 1983009808   ;;  %v41_v2 = vlaneseq  ;;  %v103_v5 = vld [vmem:[#allocation2] sm:$0xff]  ;;  %v104_v6 = vld [vmem:[#allocation2 + $0x8] sm:$0xff] }
  0x14   :  { %v39_v1 = vunpack.c.l.s4 %v617_v0  ;;  %v105_v7 = vld [vmem:[#allocation2 + $0x10] sm:$0xff]  ;;  %v509_v8 = vpack.c.bf16 %v104_v6, %v103_v5  ;;  %v106_v9 = vld [vmem:[#allocation2 + $0x18] sm:$0xff]  ;;  %v107_v11 = vld [vmem:[#allocation2 + $0x20] sm:$0xff]  ;;  %vm400_vm0 = vcmask 1045504   ;;  %s618_s7 = smov [#allocation5]   ;;  %vm431_vm1 = vcmask 1041409  }
  0x15   :  { %v42_v4 = vshrl.u32 %v41_v2, 7  ;;  %v513_v10 = vpack.c.bf16 %v106_v9, %v105_v7  ;;  %v108_v12 = vld [vmem:[#allocation2 + $0x28] sm:$0xff]  ;;  %v29_v15 = vld [vmem:[%s720_s0] sm:$0xff]  ;;  %v31_v16 = vld [vmem:[%s720_s0 + $0x10] sm:$0xff]  ;;  %s441_s8 = sshll.u32 %s618_s7, 4  ;;  %s442_s8 = int_to_ptr.vmem [resolvable:$true] %s441_s8 }
  0x16   :  { %v40_v3 = vunpack.c.0.s8 %v39_v1  ;;  %510 = vmatprep.subr.bf16.mxu0 %v509_v8  ;;  %541 = vmatprep.subr.bf16.mxu1 %v509_v8  ;;  %v517_v14 = vpack.c.bf16 %v108_v12, %v107_v11  ;;  %v109_v17 = vld [vmem:[#allocation2 + $0x30] sm:$0xff]  ;;  %v110_v18 = vld [vmem:[#allocation2 + $0x38] sm:$0xff]  ;;  %v37_v19 = vcombine.high %v29_v15, %v29_v15  ;;  %v70_v22 = vcombine.high %v31_v16, %v31_v16  ;;  %v111_v30 = vld [vmem:[#allocation2 + $0x40] sm:$0xff]  ;;  %s588_s9 = scalar_lea.vmem %s442_s8, 32  ;;  %p593_p9 = scmp.lt.s32.totalorder %s442_s8, %s442_s8 }
  0x17   :  { %512 = vmatpush3.bf16.msra.mxu0 %v509_v8  ;;  %549 = vmatpush3.bf16.msra.mxu1 %v509_v8  ;;  %v32_v21 = vld [vmem:[%s720_s0 + $0x18] sm:$0x3f]  ;;  %v521_v28 = vpack.c.bf16 %v110_v18, %v109_v17  ;;  %v112_v31 = vld [vmem:[#allocation2 + $0x48] sm:$0xff]  ;;  %v113_v42 = vld [vmem:[#allocation2 + $0x50] sm:$0xff]  ;;  %p589_p8 = scmp.ne.s32.totalorder %s442_s8, %s588_s9  ;;  %p594_p10 = scmp.lt.s32.totalorder %s588_s9, %s588_s9 }
  0x18   :  { %v651_v13 = vsub.s32 %v40_v3, %v42_v4  ;;  %514 = vmatprep.subr.bf16.mxu0 %v513_v10  ;;  %542 = vmatprep.subr.bf16.mxu1 %v513_v10  ;;  %v30_v39 = vld [vmem:[%s720_s0 + $0x8] sm:$0x3f]  ;;  %v525_v40 = vpack.c.bf16 %v112_v31, %v111_v30  ;;  %v114_v43 = vld [vmem:[#allocation2 + $0x58] sm:$0xff]  ;;  %v115_v51 = vld [vmem:[#allocation2 + $0x60] sm:$0xff]  ;;  %v87_v53 = vcombine.high %v32_v21, %v32_v21 }
  0x19   :  { %v54_v46 = vcombine.high %v30_v39, %v30_v39  ;;  %v529_v50 = vpack.c.bf16 %v114_v43, %v113_v42  ;;  %v116_v52 = vld [vmem:[#allocation2 + $0x68] sm:$0xff]  ;;  %v117_v57 = vld [vmem:[#allocation2 + $0x70] sm:$0xff]  ;;  %v118_v58 = vld [vmem:[#allocation2 + $0x78] sm:$0xff]  ;;  %p595_p11 = por %p594_p10, %p593_p9 }
  0x1a   :  { %v44_v20 = vrot.slane %v29_v15, %v651_v13  ;;  %v664_v23 = vrot.slane %v31_v16, %v651_v13  ;;  %v667_v24 = vrot.slane %v32_v21, %v651_v13  ;;  %v51_v25 = vrot.slane %v37_v19, %v651_v13 }
  0x1b   :  { %516 = vmatpush3.bf16.msra.mxu0 %v513_v10  ;;  %550 = vmatpush3.bf16.msra.mxu1 %v513_v10  ;;  %v84_v27 = vrot.slane %v70_v22, %v651_v13  ;;  %v61_v47 = vrot.slane %v30_v39, %v651_v13  ;;  %v68_v54 = vrot.slane %v54_v46, %v651_v13  ;;  %p596_p12 = pnand %p595_p11, %p589_p8 }
  0x1c   :  { %v52_v26 = vcombine.high %v44_v20, %v44_v20  ;;  %518 = vmatprep.subr.bf16.mxu0 %v517_v14  ;;  %543 = vmatprep.subr.bf16.mxu1 %v517_v14  ;;  %v85_v29 = vcombine.high %v664_v23, %v664_v23  ;;  %v53_v32 = vcombine.high %v51_v25, %v51_v25 }
  0x1d   :  { %v86_v34 = vcombine.high %v84_v27, %v84_v27  ;;  %v69_v55 = vcombine.high %v61_v47, %v61_v47  ;;  %v533_v56 = vpack.c.bf16 %v116_v52, %v115_v51  ;;  %v137_v60 = vcombine.low %v68_v54, %v664_v23 }
  0x1e   :  { %v119_v33 = vcombine.low %v44_v20, %v52_v26  ;;  %v153_v35 = vcombine.low %v85_v29, %v84_v27  ;;  %v120_v36 = vcombine.low %v51_v25, %v53_v32  ;;  %v101_v61 = vrot.slane %v87_v53, %v651_v13 }
  0x1f   :  { %520 = vmatpush3.bf16.msra.mxu0 %v517_v14  ;;  %551 = vmatpush3.bf16.msra.mxu1 %v517_v14  ;;  %v154_v38 = vcombine.low %v86_v34, %v667_v24  ;;  %v136_v59 = vcombine.low %v61_v47, %v69_v55  ;;  %v102_v62 = vcombine.high %v667_v24, %v667_v24 }
  0x20   :  { %v127_v37 = vrot.slane %v119_v33, %v651_v13  ;;  %522 = vmatprep.subr.bf16.mxu0 %v521_v28  ;;  %544 = vmatprep.subr.bf16.mxu1 %v521_v28  ;;  %v161_v41 = vrot.slane %v153_v35, %v651_v13  ;;  %v134_v44 = vrot.slane %v120_v36, %v651_v13 }
  0x21   :  { %v168_v45 = vrot.slane %v154_v38, %v651_v13  ;;  %v537_v63 = vpack.c.bf16 %v118_v58, %v117_v57  ;;  %v144_v0 = vrot.slane %v136_v59, %v651_v13  ;;  %v151_v1 = vrot.slane %v137_v60, %v651_v13 }
  0x22   :  { %v135_v48 = vcombine.low %v127_v37, %v134_v44  ;;  %v170_v2 = vcombine.low %v102_v62, %v101_v61 }
  0x23   :  { %524 = vmatpush3.bf16.msra.mxu0 %v521_v28  ;;  %552 = vmatpush3.bf16.msra.mxu1 %v521_v28  ;;  %v169_v49 = vcombine.low %v161_v41, %v168_v45  ;;  %v152_v3 = vcombine.low %v144_v0, %v151_v1 }
  0x24   :  { %526 = vmatprep.subr.bf16.mxu0 %v525_v40  ;;  %545 = vmatprep.subr.bf16.mxu1 %v525_v40  ;;  %v177_v4 = vrot.slane %v170_v2, %v651_v13 }
  0x25   :  { %503 = vmatprep.mubr.f32.mxu0 %v135_v48  ;;  %506 = vmatprep.mubr.f32.mxu1 %v169_v49 }
  0x27   :  { %528 = vmatpush3.bf16.msra.mxu0 %v525_v40  ;;  %553 = vmatpush3.bf16.msra.mxu1 %v525_v40 }
  0x28   :  { %530 = vmatprep.subr.bf16.mxu0 %v529_v50  ;;  %546 = vmatprep.subr.bf16.mxu1 %v529_v50 }
  0x2b   :  { %532 = vmatpush3.bf16.msra.mxu0 %v529_v50  ;;  %554 = vmatpush3.bf16.msra.mxu1 %v529_v50 }
  0x2c   :  { %534 = vmatprep.subr.bf16.mxu0 %v533_v56  ;;  %547 = vmatprep.subr.bf16.mxu1 %v533_v56 }
  0x2f   :  { %536 = vmatpush3.bf16.msra.mxu0 %v533_v56  ;;  %555 = vmatpush3.bf16.msra.mxu1 %v533_v56 }
  0x30   :  { %538 = vmatprep.subr.bf16.mxu0 %v537_v63  ;;  %548 = vmatprep.subr.bf16.mxu1 %v537_v63 }
  0x33   :  { %540 = vmatpush3.bf16.msra.mxu0 %v537_v63  ;;  %556 = vmatpush3.bf16.msra.mxu1 %v537_v63 }
  0x36   :  { %504 = vmatmul.mubr.f32.vlgmr.msra.gmra.mrb[0].mxu0 %v152_v3  ;;  %507 = vmatmul.mubr.f32.vlgmr.msra.gmra.mrb[0].mxu1 %v177_v4 }
 0x109   :  { %v505_v5 = vpop.f32.mrb[0].mxu0  ;;  %v508_v6 = vpop.f32.mrb[0].mxu1 }
 0x10a   :  { %v288_v7 = vcombine.high %v505_v5, %v505_v5  ;;  %v295_v8 = vrot.slane %v505_v5, %v651_v13  ;;  %v328_v9 = vrot.slane %v508_v6, %v651_v13  ;;  %v248_v10 = vpop.f32.mrb[1].mxu0  ;;  %v258_v11 = vpop.f32.mrb[1].mxu1 }
 0x10b   :  { %v271_v12 = vcombine.high %v248_v10, %v248_v10  ;;  %v278_v14 = vrot.slane %v248_v10, %v651_v13  ;;  %v305_v15 = vcombine.high %v258_v11, %v258_v11  ;;  %v312_v16 = vrot.slane %v258_v11, %v651_v13 }
 0x10c   :  { %v302_v17 = vrot.slane %v288_v7, %v651_v13  ;;  %v303_v18 = vcombine.high %v295_v8, %v295_v8  ;;  %v329_v25 = vcombine.high %v328_v9, %v328_v9 }
 0x10d   :  { %v285_v19 = vrot.slane %v271_v12, %v651_v13  ;;  %v286_v20 = vcombine.high %v278_v14, %v278_v14  ;;  %v319_v21 = vrot.slane %v305_v15, %v651_v13  ;;  %v320_v22 = vcombine.high %v312_v16, %v312_v16 }
 0x10e   :  { %v347_v23 = vcombine.low %v295_v8, %v303_v18  ;;  %v361_v24 = vrot.slane %v302_v17, %v651_v13  ;;  %v304_v26 = vcombine.high %v302_v17, %v302_v17  ;;  %v394_v38 = vrot.slane %v329_v25, %v651_v13 }
 0x10f   :  { %v287_v27 = vcombine.high %v285_v19, %v285_v19  ;;  %v330_v28 = vcombine.low %v278_v14, %v286_v20  ;;  %v321_v29 = vcombine.high %v319_v21, %v319_v21  ;;  %v364_v30 = vcombine.low %v320_v22, %v319_v21 }
 0x110   :  { %v354_v31 = vrot.slane %v347_v23, %v651_v13  ;;  %v363_v32 = vcombine.low %v304_v26, %v312_v16 }
 0x111   :  { %v331_v33 = vcombine.low %v285_v19, %v287_v27  ;;  %v378_v34 = vrot.slane %v364_v30, %v651_v13  ;;  %v380_v35 = vcombine.low %v321_v29, %v328_v9  ;;  %v338_v39 = vrot.slane %v330_v28, %v651_v13 }
 0x112   :  { %v362_v36 = vcombine.low %v354_v31, %v361_v24  ;;  %v371_v37 = vrot.slane %v363_v32, %v651_v13 }
 0x113   :  { %v345_v40 = vrot.slane %v331_v33, %v651_v13  ;;  %v387_v41 = vrot.slane %v380_v35, %v651_v13  ;;  %v450_v13 = vld [vmem:[%s722_s2] ss:$0 sm:$0xff] }
 0x114   :  { %v379_v42 = vcombine.low %v371_v37, %v378_v34  ;;  %v401_v45 = vsel %vm400_vm0, %v362_v36, -inf }
 0x115   :  { %v346_v43 = vcombine.low %v338_v39, %v345_v40  ;;  %v395_v44 = vcombine.low %v387_v41, %v394_v38 }
 0x117   :  { %v402_v46 = vmax.f32 %v346_v43, %v401_v45  ;;  %v409_v47 = vsel %vm400_vm0, %v395_v44, -inf }
 0x118   :  { %v410_v48 = vmax.f32 %v379_v42, %v409_v47 }
 0x119   :  { %v403_v49 = vrot.slane %v402_v46, 4 }
 0x11a   :  { %v411_v50 = vrot.slane %v410_v48, 4 }
 0x11b   :  { %v404_v51 = vmax.f32 %v402_v46, %v403_v49 }
 0x11c   :  { %v412_v52 = vmax.f32 %v410_v48, %v411_v50 }
 0x11d   :  { %v405_v53 = vrot.slane %v404_v51, 2 }
 0x11e   :  { %v413_v54 = vrot.slane %v412_v52, 2 }
 0x11f   :  { %v406_v55 = vmax.f32 %v404_v51, %v405_v53 }
 0x120   :  { %v414_v56 = vmax.f32 %v412_v52, %v413_v54 }
 0x121   :  { %v407_v57 = vrot.slane %v406_v55, 1 }
 0x122   :  { %v415_v58 = vrot.slane %v414_v56, 1 }
 0x123   :  { %v408_v59 = vmax.f32 %v406_v55, %v407_v57 }
 0x124   :  { %v416_v60 = vmax.f32 %v414_v56, %v415_v58 }
 0x125   :  { %v424_v61 = vadd.f32 %v450_v13, %v408_v59 }
 0x126   :  { %v425_v62 = vadd.f32 %v450_v13, %v416_v60 }
 0x127   :  { %v426_v0 = vmax.f32 %v424_v61, 0.0 }
 0x128   :  { %v427_v63 = vmax.f32 %v425_v62, 0.0 }
 0x12a   :  { %v430_v1 = vrot.slane %v427_v63, 7 }
 0x12c   :  { %v432_v2 = vsel %vm431_vm1, %v430_v1, %v426_v0 }
 0x12d   :  { %434 = vst [vmem:[#allocation5] sm:$0x3] %v432_v2 }
 0x12e   :  { %599 = shalt.err (!%p596_p12)
}
 0x12f   :  { %s600_s11 = scalar_lea.hbm %s723_s3, 32 }
 0x130   :  { %p601_p13 = scmp.ne.s32.totalorder %s723_s3, %s600_s11  ;;  %p604_p0 = scmp.lt.u32.totalorder %s600_s11, %s723_s3 }
 0x132   :  { %p606_p1 = pnand %p604_p0, %p601_p13 }
 0x134   :  { %609 = shalt.err (!%p606_p1)
}
 0x135   :  { %444 = dma.vmem_to_hbm [thread:$0]  %s442_s8, 32, %s723_s3, [#allocation4]  }
 0x136   :  { %612 = dma.done.wait [#allocation4], 32  }
 0x137   :  { %613 = vsyncadd [#allocation4], 4294967264 }
 0x138   :  { %448 = vsyncpa [#allocation3], 1 }
 0x139   :  { %449 = vsyncpa [#allocation4], 1 }

</bundles_post_ra>
